<compile_context>
chip_gen: v5e
topology: v5e:2x2
jax: 0.10.0
libtpu: 0.0.40
codegen_flags: <defaults>
</compile_context>

<pallas_src>
import jax
import jax.numpy as jnp
from jax.experimental import pallas as pl
from jax.experimental.pallas import tpu as pltpu

NEG_SLOPE = 0.01  # nn.LeakyReLU default


def _make_fused_vlayers_kernel(num_layers, gs, resnet):
    """Builds a kernel closed over the (static) layer count, GS and resnet flag."""

    def kernel(g_ref, x_ref, *refs):
        # g_ref: (1, GS, N, N)  adjacency for batch b (all graph channels)
        # x_ref: (1, N, C0)     input node features for batch b
        # refs : (W_0, b_0, W_1, b_1, ..., W_{L-1}, b_{L-1}, o_ref)
        #   W_l: (GS, C_l, P_l)   b_l: (GS, 1, P_l)   o_ref: (1, N, P_last)
        o_ref = refs[-1]
        p_refs = refs[:-1]

        x = x_ref[0].astype(jnp.float32)  # (N, C0), stays on-chip across layers

        for li in range(num_layers):
            w_ref = p_refs[2 * li]       # (GS, C, P)
            b_ref = p_refs[2 * li + 1]   # (GS, 1, P)
            acc = None
            for s in range(gs):          # GS is small -> fully unrolled
                # per-graph-channel linear
                y = jnp.dot(x, w_ref[s], preferred_element_type=jnp.float32) + b_ref[s]
                # adjacency matmul
                z = jnp.dot(g_ref[0, s], y, preferred_element_type=jnp.float32)
                # LeakyReLU BEFORE the GS aggregation (matches the torch module)
                z = jnp.where(z >= 0, z, NEG_SLOPE * z)
                acc = z if acc is None else acc + z
            if resnet and acc.shape == x.shape:
                acc = acc + x
            x = acc

        o_ref[0] = x.astype(o_ref.dtype)  # single output write per grid step

    return kernel


def vlayers_forward(G, x, params, resnet=False):
    """VLayers.forward with norm=None (default): fused chain of GraphMatLayerFast.

    G: (B, GS, N, N) f32, x: (B, N, C0) f32
    params: list of (W, b) with W: (GS, C_in, C_out), b: (GS, C_out).
    agg_func is sum over the GS dim (an aggregation is required for layer
    composition; the torch default agg_func=None does not compose for >1 layer).
    Returns (B, N, C_out_last) f32.
    """
    B, GS, N, _ = G.shape
    C0 = x.shape[-1]
    P_last = params[-1][0].shape[-1]

    in_specs = [
        pl.BlockSpec((1, GS, N, N), lambda bi: (bi, 0, 0, 0)),  # G (DMA'd once/batch)
        pl.BlockSpec((1, N, C0),    lambda bi: (bi, 0, 0)),     # x
    ]
    flat_params = []
    for (W, b) in params:
        gs_w, c_in, c_out = W.shape
        flat_params.append(W)
        flat_params.append(b.reshape(gs_w, 1, c_out))
        # Full arrays, constant block index -> not re-fetched per grid step.
        in_specs.append(pl.BlockSpec((gs_w, c_in, c_out), lambda bi: (0, 0, 0)))
        in_specs.append(pl.BlockSpec((gs_w, 1, c_out),    lambda bi: (0, 0, 0)))

    kernel = _make_fused_vlayers_kernel(len(params), GS, resnet)

    return pl.pallas_call(
        kernel,
        out_shape=jax.ShapeDtypeStruct((B, N, P_last), jnp.float32),
        grid_spec=pltpu.PrefetchScalarGridSpec(
            num_scalar_prefetch=0,
            grid=(B,),                       # one batch element per step
            in_specs=in_specs,
            out_specs=pl.BlockSpec((1, N, P_last), lambda bi: (bi, 0, 0)),
        ),
        compiler_params=pltpu.CompilerParams(
            # batch axis sharded across TensorCores on v7x; no reduction axis left.
            dimension_semantics=("parallel",)),
    )(G, x, *flat_params)


def _reference_forward(G, x, params, resnet=False):
    # pure-jnp reference mirroring the torch einsum "ijkl,jilm->jikm"
    for (W, b) in params:
        y = jnp.einsum('bnc,scp->sbnp', x, W) + b[:, None, None, :]
        xo = jnp.einsum('bskl,sblm->sbkm', G, y)
        xo = jnp.where(xo >= 0, xo, NEG_SLOPE * xo)
        x2 = xo.sum(axis=0)
        if resnet and x.shape == x2.shape:
            x2 = x2 + x
        x = x2
    return x


if __name__ == "__main__":
    # Small, module-consistent shapes.
    B, N = 2, 16                 # batch, max atoms
    GS = 2                       # graph channels
    input_feature_n = 8
    output_features_n = [16, 16]
    resnet = False               # module default
    # norm=None (module default) -> use_bias=True, no bn layers.
    # TODO(synk): MaskedBatchNorm1d / MaskedLayerNorm1d branches (norm != None) not implemented.
    # Note: edge_edge / edge_vert / edge_feat args of VLayers.forward are unused by
    # GraphMatLayerFast and therefore omitted.

    key = jax.random.PRNGKey(0)
    kG, kx, *kws = jax.random.split(key, 2 + 2 * len(output_features_n))

    G = jax.nn.softmax(jax.random.normal(kG, (B, GS, N, N), jnp.float32), axis=-1)
    x = jax.random.normal(kx, (B, N, input_feature_n), jnp.float32)

    # Deterministic parameter init (torch init uses normal(0, noise); 0.1 scale
    # gives non-degenerate values — init scale does not change semantics).
    params = []
    c_in = input_feature_n
    for li, c_out in enumerate(output_features_n):
        W = 0.1 * jax.random.normal(kws[2 * li], (GS, c_in, c_out), jnp.float32)
        b = 0.1 * jax.random.normal(kws[2 * li + 1], (GS, c_out), jnp.float32)
        params.append((W, b))
        c_in = c_out

    out = vlayers_forward(G, x, params, resnet=resnet)
    out = jax.block_until_ready(out)

    ref = _reference_forward(G, x, params, resnet=resnet)
    assert out.shape == (B, N, output_features_n[-1])
    assert jnp.allclose(out, ref, atol=1e-4, rtol=1e-4), "mismatch vs reference"

    print("KERNEL_OK")
</pallas_src>

<mosaic_0001>
module attributes {stable_mosaic.version = 11 : i64} {
  func.func @kernel(%arg0: i32, %arg1: memref<1x2x16x16xf32, #tpu.memory_space<vmem>>, %arg2: memref<1x16x8xf32, #tpu.memory_space<vmem>>, %arg3: memref<2x8x16xf32, #tpu.memory_space<vmem>>, %arg4: memref<2x1x16xf32, #tpu.memory_space<vmem>>, %arg5: memref<2x16x16xf32, #tpu.memory_space<vmem>>, %arg6: memref<2x1x16xf32, #tpu.memory_space<vmem>>, %arg7: memref<1x16x16xf32, #tpu.memory_space<vmem>>) attributes {dimension_semantics = [#tpu.dimension_semantics<parallel>], iteration_bounds = array<i64: 2>, scalar_prefetch = 0 : i64, scratch_operands = 0 : i64, tpu.core_type = #tpu.core_type<tc>, window_params = [{transform_indices = @transform_0, window_bounds = array<i64: 1, 2, 16, 16>}, {transform_indices = @transform_1, window_bounds = array<i64: 1, 16, 8>}, {pipeline_mode = #tpu.pipeline_mode<synchronous>, transform_indices = @transform_2, window_bounds = array<i64: 2, 8, 16>}, {pipeline_mode = #tpu.pipeline_mode<synchronous>, transform_indices = @transform_3, window_bounds = array<i64: 2, 1, 16>}, {pipeline_mode = #tpu.pipeline_mode<synchronous>, transform_indices = @transform_4, window_bounds = array<i64: 2, 16, 16>}, {pipeline_mode = #tpu.pipeline_mode<synchronous>, transform_indices = @transform_5, window_bounds = array<i64: 2, 1, 16>}, {transform_indices = @transform_6, window_bounds = array<i64: 1, 16, 16>}]} {
    %c0 = arith.constant 0 : index
    %c0_0 = arith.constant 0 : index
    %c0_1 = arith.constant 0 : index
    %0 = vector.load %arg2[%c0, %c0_0, %c0_1] : memref<1x16x8xf32, #tpu.memory_space<vmem>>, vector<1x16x8xf32>
    %1 = vector.shape_cast %0 : vector<1x16x8xf32> to vector<16x8xf32>
    %c0_2 = arith.constant 0 : index
    %c0_3 = arith.constant 0 : index
    %c0_4 = arith.constant 0 : index
    %2 = vector.load %arg3[%c0_2, %c0_3, %c0_4] : memref<2x8x16xf32, #tpu.memory_space<vmem>>, vector<1x8x16xf32>
    %3 = vector.shape_cast %2 : vector<1x8x16xf32> to vector<8x16xf32>
    %cst = arith.constant dense<0.000000e+00> : vector<16x16xf32>
    %4 = tpu.matmul %1, %3, %cst {dimension_numbers = #tpu.dot_dimension_numbers<[1], [0], [0], [1], [0, 0, 1, 1], [], []>} : vector<16x8xf32>, vector<8x16xf32>, vector<16x16xf32> -> vector<16x16xf32>
    %c0_5 = arith.constant 0 : index
    %c0_6 = arith.constant 0 : index
    %c0_7 = arith.constant 0 : index
    %5 = vector.load %arg4[%c0_5, %c0_6, %c0_7] : memref<2x1x16xf32, #tpu.memory_space<vmem>>, vector<1x1x16xf32>
    %6 = vector.shape_cast %5 : vector<1x1x16xf32> to vector<1x16xf32>
    %7 = vector.broadcast %6 : vector<1x16xf32> to vector<16x16xf32>
    %8 = arith.addf %4, %7 : vector<16x16xf32>
    %c0_8 = arith.constant 0 : index
    %c0_9 = arith.constant 0 : index
    %c0_10 = arith.constant 0 : index
    %c0_11 = arith.constant 0 : index
    %9 = vector.load %arg1[%c0_8, %c0_9, %c0_10, %c0_11] : memref<1x2x16x16xf32, #tpu.memory_space<vmem>>, vector<1x1x16x16xf32>
    %10 = vector.shape_cast %9 : vector<1x1x16x16xf32> to vector<16x16xf32>
    %cst_12 = arith.constant dense<0.000000e+00> : vector<16x16xf32>
    %11 = tpu.matmul %10, %8, %cst_12 {dimension_numbers = #tpu.dot_dimension_numbers<[1], [0], [0], [1], [0, 0, 1, 1], [], []>} : vector<16x16xf32>, vector<16x16xf32>, vector<16x16xf32> -> vector<16x16xf32>
    %cst_13 = arith.constant 0.000000e+00 : f32
    %12 = vector.broadcast %cst_13 : f32 to vector<16x16xf32>
    %13 = arith.cmpf oge, %11, %12 : vector<16x16xf32>
    %cst_14 = arith.constant 0.00999999977 : f32
    %14 = vector.broadcast %cst_14 : f32 to vector<16x16xf32>
    %15 = arith.mulf %14, %11 : vector<16x16xf32>
    %16 = arith.select %13, %11, %15 : vector<16x16xi1>, vector<16x16xf32>
    %c1 = arith.constant 1 : index
    %c0_15 = arith.constant 0 : index
    %c0_16 = arith.constant 0 : index
    %17 = vector.load %arg3[%c1, %c0_15, %c0_16] : memref<2x8x16xf32, #tpu.memory_space<vmem>>, vector<1x8x16xf32>
    %18 = vector.shape_cast %17 : vector<1x8x16xf32> to vector<8x16xf32>
    %cst_17 = arith.constant dense<0.000000e+00> : vector<16x16xf32>
    %19 = tpu.matmul %1, %18, %cst_17 {dimension_numbers = #tpu.dot_dimension_numbers<[1], [0], [0], [1], [0, 0, 1, 1], [], []>} : vector<16x8xf32>, vector<8x16xf32>, vector<16x16xf32> -> vector<16x16xf32>
    %c1_18 = arith.constant 1 : index
    %c0_19 = arith.constant 0 : index
    %c0_20 = arith.constant 0 : index
    %20 = vector.load %arg4[%c1_18, %c0_19, %c0_20] : memref<2x1x16xf32, #tpu.memory_space<vmem>>, vector<1x1x16xf32>
    %21 = vector.shape_cast %20 : vector<1x1x16xf32> to vector<1x16xf32>
    %22 = vector.broadcast %21 : vector<1x16xf32> to vector<16x16xf32>
    %23 = arith.addf %19, %22 : vector<16x16xf32>
    %c0_21 = arith.constant 0 : index
    %c1_22 = arith.constant 1 : index
    %c0_23 = arith.constant 0 : index
    %c0_24 = arith.constant 0 : index
    %24 = vector.load %arg1[%c0_21, %c1_22, %c0_23, %c0_24] : memref<1x2x16x16xf32, #tpu.memory_space<vmem>>, vector<1x1x16x16xf32>
    %25 = vector.shape_cast %24 : vector<1x1x16x16xf32> to vector<16x16xf32>
    %cst_25 = arith.constant dense<0.000000e+00> : vector<16x16xf32>
    %26 = tpu.matmul %25, %23, %cst_25 {dimension_numbers = #tpu.dot_dimension_numbers<[1], [0], [0], [1], [0, 0, 1, 1], [], []>} : vector<16x16xf32>, vector<16x16xf32>, vector<16x16xf32> -> vector<16x16xf32>
    %cst_26 = arith.constant 0.000000e+00 : f32
    %27 = vector.broadcast %cst_26 : f32 to vector<16x16xf32>
    %28 = arith.cmpf oge, %26, %27 : vector<16x16xf32>
    %cst_27 = arith.constant 0.00999999977 : f32
    %29 = vector.broadcast %cst_27 : f32 to vector<16x16xf32>
    %30 = arith.mulf %29, %26 : vector<16x16xf32>
    %31 = arith.select %28, %26, %30 : vector<16x16xi1>, vector<16x16xf32>
    %32 = arith.addf %16, %31 : vector<16x16xf32>
    %c0_28 = arith.constant 0 : index
    %c0_29 = arith.constant 0 : index
    %c0_30 = arith.constant 0 : index
    %33 = vector.load %arg5[%c0_28, %c0_29, %c0_30] : memref<2x16x16xf32, #tpu.memory_space<vmem>>, vector<1x16x16xf32>
    %34 = vector.shape_cast %33 : vector<1x16x16xf32> to vector<16x16xf32>
    %cst_31 = arith.constant dense<0.000000e+00> : vector<16x16xf32>
    %35 = tpu.matmul %32, %34, %cst_31 {dimension_numbers = #tpu.dot_dimension_numbers<[1], [0], [0], [1], [0, 0, 1, 1], [], []>} : vector<16x16xf32>, vector<16x16xf32>, vector<16x16xf32> -> vector<16x16xf32>
    %c0_32 = arith.constant 0 : index
    %c0_33 = arith.constant 0 : index
    %c0_34 = arith.constant 0 : index
    %36 = vector.load %arg6[%c0_32, %c0_33, %c0_34] : memref<2x1x16xf32, #tpu.memory_space<vmem>>, vector<1x1x16xf32>
    %37 = vector.shape_cast %36 : vector<1x1x16xf32> to vector<1x16xf32>
    %38 = vector.broadcast %37 : vector<1x16xf32> to vector<16x16xf32>
    %39 = arith.addf %35, %38 : vector<16x16xf32>
    %c0_35 = arith.constant 0 : index
    %c0_36 = arith.constant 0 : index
    %c0_37 = arith.constant 0 : index
    %c0_38 = arith.constant 0 : index
    %40 = vector.load %arg1[%c0_35, %c0_36, %c0_37, %c0_38] : memref<1x2x16x16xf32, #tpu.memory_space<vmem>>, vector<1x1x16x16xf32>
    %41 = vector.shape_cast %40 : vector<1x1x16x16xf32> to vector<16x16xf32>
    %cst_39 = arith.constant dense<0.000000e+00> : vector<16x16xf32>
    %42 = tpu.matmul %41, %39, %cst_39 {dimension_numbers = #tpu.dot_dimension_numbers<[1], [0], [0], [1], [0, 0, 1, 1], [], []>} : vector<16x16xf32>, vector<16x16xf32>, vector<16x16xf32> -> vector<16x16xf32>
    %cst_40 = arith.constant 0.000000e+00 : f32
    %43 = vector.broadcast %cst_40 : f32 to vector<16x16xf32>
    %44 = arith.cmpf oge, %42, %43 : vector<16x16xf32>
    %cst_41 = arith.constant 0.00999999977 : f32
    %45 = vector.broadcast %cst_41 : f32 to vector<16x16xf32>
    %46 = arith.mulf %45, %42 : vector<16x16xf32>
    %47 = arith.select %44, %42, %46 : vector<16x16xi1>, vector<16x16xf32>
    %c1_42 = arith.constant 1 : index
    %c0_43 = arith.constant 0 : index
    %c0_44 = arith.constant 0 : index
    %48 = vector.load %arg5[%c1_42, %c0_43, %c0_44] : memref<2x16x16xf32, #tpu.memory_space<vmem>>, vector<1x16x16xf32>
    %49 = vector.shape_cast %48 : vector<1x16x16xf32> to vector<16x16xf32>
    %cst_45 = arith.constant dense<0.000000e+00> : vector<16x16xf32>
    %50 = tpu.matmul %32, %49, %cst_45 {dimension_numbers = #tpu.dot_dimension_numbers<[1], [0], [0], [1], [0, 0, 1, 1], [], []>} : vector<16x16xf32>, vector<16x16xf32>, vector<16x16xf32> -> vector<16x16xf32>
    %c1_46 = arith.constant 1 : index
    %c0_47 = arith.constant 0 : index
    %c0_48 = arith.constant 0 : index
    %51 = vector.load %arg6[%c1_46, %c0_47, %c0_48] : memref<2x1x16xf32, #tpu.memory_space<vmem>>, vector<1x1x16xf32>
    %52 = vector.shape_cast %51 : vector<1x1x16xf32> to vector<1x16xf32>
    %53 = vector.broadcast %52 : vector<1x16xf32> to vector<16x16xf32>
    %54 = arith.addf %50, %53 : vector<16x16xf32>
    %c0_49 = arith.constant 0 : index
    %c1_50 = arith.constant 1 : index
    %c0_51 = arith.constant 0 : index
    %c0_52 = arith.constant 0 : index
    %55 = vector.load %arg1[%c0_49, %c1_50, %c0_51, %c0_52] : memref<1x2x16x16xf32, #tpu.memory_space<vmem>>, vector<1x1x16x16xf32>
    %56 = vector.shape_cast %55 : vector<1x1x16x16xf32> to vector<16x16xf32>
    %cst_53 = arith.constant dense<0.000000e+00> : vector<16x16xf32>
    %57 = tpu.matmul %56, %54, %cst_53 {dimension_numbers = #tpu.dot_dimension_numbers<[1], [0], [0], [1], [0, 0, 1, 1], [], []>} : vector<16x16xf32>, vector<16x16xf32>, vector<16x16xf32> -> vector<16x16xf32>
    %cst_54 = arith.constant 0.000000e+00 : f32
    %58 = vector.broadcast %cst_54 : f32 to vector<16x16xf32>
    %59 = arith.cmpf oge, %57, %58 : vector<16x16xf32>
    %cst_55 = arith.constant 0.00999999977 : f32
    %60 = vector.broadcast %cst_55 : f32 to vector<16x16xf32>
    %61 = arith.mulf %60, %57 : vector<16x16xf32>
    %62 = arith.select %59, %57, %61 : vector<16x16xi1>, vector<16x16xf32>
    %63 = arith.addf %47, %62 : vector<16x16xf32>
    %c0_56 = arith.constant 0 : index
    %c0_57 = arith.constant 0 : index
    %c0_58 = arith.constant 0 : index
    %64 = vector.load %arg7[%c0_56, %c0_57, %c0_58] : memref<1x16x16xf32, #tpu.memory_space<vmem>>, vector<1x16x16xf32>
    %65 = vector.shape_cast %64 : vector<1x16x16xf32> to vector<16x16xf32>
    %66 = vector.shape_cast %63 : vector<16x16xf32> to vector<1x16x16xf32>
    tpu.vector_store %arg7[%c0_56, %c0_57, %c0_58], %66 {strides = array<i32>} : memref<1x16x16xf32, #tpu.memory_space<vmem>>, vector<1x16x16xf32>,
    return
  }
  func.func @transform_0(%arg0: i32) -> (i32, i32, i32, i32) {
    %c0_i32 = arith.constant 0 : i32
    %c0_i32_0 = arith.constant 0 : i32
    %c0_i32_1 = arith.constant 0 : i32
    %c0_i32_2 = arith.constant 0 : i32
    return %arg0, %c0_i32, %c0_i32_0, %c0_i32_1 : i32, i32, i32, i32
  }
  func.func @transform_1(%arg0: i32) -> (i32, i32, i32) {
    %c0_i32 = arith.constant 0 : i32
    %c0_i32_0 = arith.constant 0 : i32
    %c0_i32_1 = arith.constant 0 : i32
    return %arg0, %c0_i32, %c0_i32_0 : i32, i32, i32
  }
  func.func @transform_2(%arg0: i32) -> (i32, i32, i32) {
    %c0_i32 = arith.constant 0 : i32
    %c0_i32_0 = arith.constant 0 : i32
    %c0_i32_1 = arith.constant 0 : i32
    %c0_i32_2 = arith.constant 0 : i32
    return %c0_i32, %c0_i32_0, %c0_i32_1 : i32, i32, i32
  }
  func.func @transform_3(%arg0: i32) -> (i32, i32, i32) {
    %c0_i32 = arith.constant 0 : i32
    %c0_i32_0 = arith.constant 0 : i32
    %c0_i32_1 = arith.constant 0 : i32
    %c0_i32_2 = arith.constant 0 : i32
    return %c0_i32, %c0_i32_0, %c0_i32_1 : i32, i32, i32
  }
  func.func @transform_4(%arg0: i32) -> (i32, i32, i32) {
    %c0_i32 = arith.constant 0 : i32
    %c0_i32_0 = arith.constant 0 : i32
    %c0_i32_1 = arith.constant 0 : i32
    %c0_i32_2 = arith.constant 0 : i32
    return %c0_i32, %c0_i32_0, %c0_i32_1 : i32, i32, i32
  }
  func.func @transform_5(%arg0: i32) -> (i32, i32, i32) {
    %c0_i32 = arith.constant 0 : i32
    %c0_i32_0 = arith.constant 0 : i32
    %c0_i32_1 = arith.constant 0 : i32
    %c0_i32_2 = arith.constant 0 : i32
    return %c0_i32, %c0_i32_0, %c0_i32_1 : i32, i32, i32
  }
  func.func @transform_6(%arg0: i32) -> (i32, i32, i32) {
    %c0_i32 = arith.constant 0 : i32
    %c0_i32_0 = arith.constant 0 : i32
    %c0_i32_1 = arith.constant 0 : i32
    return %arg0, %c0_i32, %c0_i32_0 : i32, i32, i32
  }
}

</mosaic_0001>

<bundles_post_ra>
// kernel: tpu_custom_call.1
= control target key start
LH: loop header
LB: loop body
LE: loop exit
PB: predicated region body
PF: predicated region fallthrough
CT: control target
= control target key end

     0   :  { %11 = vsyncpa [#allocation3], 0  ;;  %s1082_s0 = inlined_call_operand.hbm [shape: f32[2,2,16,16], index: 0, kind: input, shape index: {}]   ;;  %s1083_s1 = inlined_call_operand.vmem [shape: f32[2,16,8], index: 1, kind: input, shape index: {}]   ;;  %s1084_s2 = inlined_call_operand.vmem [shape: f32[2,8,16], index: 2, kind: input, shape index: {}]   ;;  %s1085_s3 = inlined_call_operand.vmem [shape: f32[2,1,16], index: 3, kind: input, shape index: {}]   ;;  %s1086_s4 = inlined_call_operand.vmem [shape: f32[2,16,16], index: 4, kind: input, shape index: {}]   ;;  %s1087_s5 = inlined_call_operand.vmem [shape: f32[2,1,16], index: 5, kind: input, shape index: {}]   ;;  %s1088_s6 = inlined_call_operand.hbm [shape: f32[2,16,16], index: 6, kind: output, shape index: {}]  }
   0x1   :  { %13 = vsyncpa [#allocation3 + $0x1], 0 }
   0x2   :  { %14 = vsyncpa [#allocation4], 0 }
   0x3   :  { %16 = vsyncpa [#allocation4 + $0x1], 0  ;;  %s899_s21 = smov 0   ;;  %s901_s22 = smov 0  }
   0x4   :  { %s903_s23 = smov 0   ;;  %s905_s24 = smov 0  }
   0x5 LB: > { %s920_s25 = sadd.s32 4294967295, %s858_s24   ;;  %s666_s26 = sadd.s32 4294967294, %s858_s24   ;;  %s858_s24 = sphi %s905_s24, %s1098_s24   ;;  %s854_s23 = sphi %s903_s23, %s1097_s23   ;;  %s850_s22 = sphi %s901_s22, %s1096_s22   ;;  %s846_s21 = sphi %s899_s21, %s1095_s21  }
   0x6   : > { %s924_s27 = sadd.s32 1, %s858_s24   ;;  %s29_s28 = sadd.s32 1, %s854_s23 }
   0x7   : > { %s26_s29 = ssub.s32 %s858_s24, %s924_s27  ;;  %p36_p0 = scmp.ne.s32.totalorder %s854_s23, %s850_s22 }
   0x8   : > { %p27_p1 = scmp.eq.s32.totalorder %s26_s29, 0  ;;  %p37_p2 = scmp.eq.s32.totalorder %s858_s24, 0 }
   0x9   : > { %p42_p3 = scmp.ne.s32.totalorder %s850_s22, %s846_s21  ;;  %p43_p4 = scmp.eq.s32.totalorder %s920_s25, 0 }
   0xa   : > { %s936_s30 = scalar_select %p27_p1, %s854_s23, %s29_s28  }
   0xb   : > { %p938_p5 = por %p37_p2, %p36_p0  ;;  %p942_p6 = por %p43_p4, %p42_p3 }
   0xc   : > { %p176_p7 = scmp.eq.s32.totalorder %s920_s25, 1  ;;  %p182_p8 = scmp.eq.s32.totalorder %s666_s26, 1 }
   0xd   : > { %p720_p10 = scmp.lt.s32.totalorder %s858_s24, 2  ;;  %s214_s11 = sand.u32 1, %s854_s23  }
   0xe   : > { %p949_p11 = por %p176_p7, %p36_p0  ;;  %p953_p12 = por %p182_p8, %p42_p3 }
   0xf   : > { %s705_s12 = sshll.u32 %s858_s24, 5  ;;  %s669_s13 = sshll.u32 %s214_s11, 5 }
  0x10   : > { %s223_s16 = scalar_lea.hbm %s1082_s0, %s705_s12  ;;  %s218_s18 = scalar_lea.vmem [#allocation2], %s669_s13 }
  0x11   : > { %s224_s17 = sshll.u32 %s223_s16, 4  ;;  %s226_s19 = sshll.u32 %s218_s18, 4  ;;  %s225_s17 = int_to_ptr.hbm [resolvable:$true] %s224_s17  ;;  %s227_s19 = int_to_ptr.vmem [resolvable:$true] %s226_s19 }
  0x12   : > { %p964_p13 = pnand %p720_p10, %p938_p5  ;;  %p672_p0 = scmp.ge.s32.totalorder %s858_s24, 1 }
  0x13   : > { %p242_p1 = scmp.lt.s32.totalorder %s858_s24, 3  ;;  %s215_s26 = scalar_lea.sflag [#allocation3], %s214_s11 }
  0x14   : > { %s762_s28 = sshra.s32 %s225_s17, 4  ;;  %p766_p3 = pneg %p964_p13  ;;  %s763_s28 = int_to_ptr.hbm [resolvable:$true] %s762_s28 }
  0x15   : > { %s764_s29 = scalar_lea.hbm %s763_s28, 32  ;;  %s769_s7 = scalar_lea.hbm %s1082_s0, 64 }
  0x16   : > { %p765_p2 = scmp.ne.s32.totalorder %s763_s28, %s764_s29  ;;  %p770_p5 = scmp.lt.s32.totalorder %s763_s28, %s1082_s0 }
  0x17   : > { %p771_p8 = scmp.lt.s32.totalorder %s769_s7, %s764_s29 }
  0x18   : > { %p767_p4 = pnand %p766_p3, %p765_p2 }
  0x19   : > { %p772_p10 = por %p771_p8, %p770_p5 }
  0x1a   : > { %p768_p7 = pneg %p767_p4 }
  0x1c   : > { %p773_p9 = pnand %p772_p10, %p768_p7 }
  0x1e   : > { %776 = shalt.err (!%p773_p9)
}
  0x1f   : > { %s860_s11 = smov 128   ;;  %s861_s16 = smov 8  }
  0x20   : > { %715 = dma.hbm_to_vmem [thread:$0]  (!%p964_p13), %s225_s17, 512, %s227_s19, %s215_s26, %s860_s11, %s860_s11, %s861_s16  }
  0x21   : > { %p243_p2 = pnand %p672_p0, %p242_p1 }
  0x22   : > { %s985_s18 = sand.u32 (!%p243_p2), 1, %s850_s22  }
  0x23   : > { %246 = sbr.rel (%p243_p2) target bundleno = 618 (0x26a), region = 44  ;;  %s673_s28 = sshll.u32 (!%p243_p2), %s985_s18, 5 }
  0x24   : > { %s249_s29 = scalar_lea.sflag (!%p243_p2), [#allocation3], %s985_s18  ;;  %s989_s12 = scalar_lea.vmem (!%p243_p2), [#allocation2], %s673_s28 }
  0x28   : > { %837 = dma.done.wait (%p942_p6), %s249_s29, 512  }
  0x29   : > { %839 = vsyncadd (%p942_p6), %s249_s29, 4294966784  ;;  %p287_p9 = scmp.lt.s32.totalorder %s920_s25, 1  ;;  %vm299_vm0 = vcmask 64512   ;;  %v681_v0 = vld [vmem:[%s1084_s2 + $0x8] sm:$0xff]  ;;  %v294_v2 = vld [vmem:[%s1084_s2] sm:$0xff]  ;;  %vm331_vm1 = vcmask 130048  }
  0x2a   : > { %389 = vmatpush.msra.mxu2 %v681_v0  ;;  %321 = vmatpush.msra.mxu0 %v294_v2  ;;  %v758_v5 = vld [vmem:[%s1085_s3] ss:$0 sm:$0xff]  ;;  %v759_v11 = vld [vmem:[%s1085_s3 + $0x1] ss:$0 sm:$0xff]  ;;  %v685_v15 = vld [vmem:[%s989_s12 + $0x10] sm:$0xff]  ;;  %s674_s28 = sshll.u32 %s985_s18, 4 }
  0x2b   : > { %s288_s17 = scalar_select %p287_p9, %s920_s25, 1  ;;  %v329_v10 = vld [vmem:[%s989_s12] sm:$0xff]  ;;  %v330_v16 = vld [vmem:[%s989_s12 + $0x8] sm:$0xff]  ;;  %v686_v17 = vld [vmem:[%s989_s12 + $0x18] sm:$0xff] }
  0x2c   : > { %v438_v18 = vld [vmem:[%s1086_s4 + $0x8] sm:$0xff]  ;;  %v694_v19 = vld [vmem:[%s1086_s4 + $0x18] sm:$0xff]  ;;  %v437_v20 = vld [vmem:[%s1086_s4] sm:$0xff]  ;;  %s707_s29 = sshll.u32 %s920_s25, 4  ;;  %s286_s26 = scalar_lea.vmem [#allocation5], %s674_s28 }
  0x2d   : > { %s706_s19 = sshll.u32 %s288_s17, 4  ;;  %463 = vmatpush.msrb.mxu0 %v438_v18  ;;  %v693_v21 = vld [vmem:[%s1086_s4 + $0x10] sm:$0xff]  ;;  %v760_v38 = vld [vmem:[%s1087_s5] ss:$0 sm:$0xff]  ;;  %v761_v39 = vld [vmem:[%s1087_s5 + $0x1] ss:$0 sm:$0xff]  ;;  %s577_s20 = scalar_lea.hbm %s1088_s6, %s707_s29 }
  0x2e   : > { %s291_s13 = scalar_lea.vmem %s1083_s1, %s706_s19  ;;  %s580_s7 = sshll.u32 %s577_s20, 4  ;;  %s581_s7 = int_to_ptr.hbm [resolvable:$true] %s580_s7 }
  0x2f   : > { %v292_v1 = vld [vmem:[%s291_s13] sm:$0xff]  ;;  %v293_v3 = vld [vmem:[%s291_s13 + $0x8] sm:$0xff]  ;;  %464 = vmatpush.msrb.mxu0 %v437_v20  ;;  %s578_s13 = sshll.u32 %s286_s26, 4  ;;  %s566_s25 = scalar_lea.sflag [#allocation4], %s985_s18  ;;  %s579_s13 = int_to_ptr.vmem [resolvable:$true] %s578_s13 }
  0x30   : > { %683 = vmatmul.msk.f32.vlgmr.msra.gmra.mxu2 %vm299_vm0, %v292_v1  ;;  %677 = vmatmul.msk.f32.vlgmr.msra.gmra.mxu0 %vm299_vm0, %v292_v1  ;;  %s806_s14 = sshra.s32 %s581_s7, 4  ;;  %s812_s8 = scalar_lea.hbm %s1088_s6, 32  ;;  %s807_s14 = int_to_ptr.hbm [resolvable:$true] %s806_s14 }
  0x31   : > { %s808_s15 = scalar_lea.hbm %s807_s14, 16  ;;  %p813_p1 = scmp.lt.s32.totalorder %s807_s14, %s1088_s6 }
  0x32   : > { %p809_p6 = scmp.ne.s32.totalorder %s807_s14, %s808_s15  ;;  %p814_p3 = scmp.lt.s32.totalorder %s812_s8, %s808_s15 }
  0x34   : > { %p810_p13 = pnand %p809_p6, %p949_p11  ;;  %p815_p4 = por %p814_p3, %p813_p1 }
  0x36   : > { %p811_p0 = pneg %p810_p13 }
  0x38   : > { %684 = vmatmul.msk.f32.gmra.mxu2 %vm299_vm0, %v293_v3  ;;  %678 = vmatmul.msk.f32.gmra.mxu0 %vm299_vm0, %v293_v3  ;;  %p816_p7 = pnand %p815_p4, %p811_p0 }
  0xad   : > { %v323_v4 = vpop.f32.mrf.mxu0 }
  0xae   : > { %v324_v8 = vadd.f32 %v758_v5, %v323_v4 }
  0xb3   : > { %v391_v6 = vpop.f32.mrf.mxu2 }
  0xb4   : > { %v392_v14 = vadd.f32 %v759_v11, %v391_v6 }
  0xb5   : > { %v326_v7 = vpop.f32.mrf.mxu0 }
  0xb6   : > { %v327_v9 = vadd.f32 %v758_v5, %v326_v7 }
  0xb8   : > { %352 = vmatpush.msra.mxu1 %v327_v9 }
  0xba   : > { %353 = vmatpush.msra.mxu1 %v324_v8 }
  0xbb   : > { %v394_v12 = vpop.f32.mrf.mxu2  ;;  %679 = vmatmul.msk.f32.vlgmr.msra.gmra.mxu1 %vm331_vm1, %v329_v10 }
  0xbc   : > { %v395_v13 = vadd.f32 %v759_v11, %v394_v12  ;;  %523 = vmatpush.msrb.mxu1 %v694_v19 }
  0xbe   : > { %420 = vmatpush.msra.mxu3 %v395_v13  ;;  %524 = vmatpush.msrb.mxu1 %v693_v21 }
  0xc0   : > { %421 = vmatpush.msra.mxu3 %v392_v14 }
  0xc1   : > { %687 = vmatmul.msk.f32.vlgmr.msra.gmra.mxu3 %vm331_vm1, %v685_v15 }
  0xc3   : > { %680 = vmatmul.msk.f32.gmra.mxu1 %vm331_vm1, %v330_v16 }
  0xc9   : > { %688 = vmatmul.msk.f32.gmra.mxu3 %vm331_vm1, %v686_v17 }
 0x138   : > { %v355_v22 = vpop.f32.mrf.mxu1 }
 0x139   : > { %v363_v23 = vmul.f32 0.01, %v355_v22  ;;  %vm361_vm2 = vcmp.ge.f32.partialorder %v355_v22, 0.0 }
 0x13b   : > { %v365_v26 = vsel %vm361_vm2, %v355_v22, %v363_v23 }
 0x140   : > { %v358_v29 = vpop.f32.mrf.mxu1 }
 0x141   : > { %v364_v30 = vmul.f32 0.01, %v358_v29  ;;  %vm362_vm4 = vcmp.ge.f32.partialorder %v358_v29, 0.0 }
 0x143   : > { %v366_v33 = vsel %vm362_vm4, %v358_v29, %v364_v30 }
 0x144   : > { %v423_v24 = vpop.f32.mrf.mxu3 }
 0x145   : > { %vm429_vm3 = vcmp.ge.f32.partialorder %v423_v24, 0.0  ;;  %v431_v25 = vmul.f32 0.01, %v423_v24 }
 0x147   : > { %v433_v27 = vsel %vm429_vm3, %v423_v24, %v431_v25 }
 0x148   : > { %v435_v28 = vadd.f32 %v433_v27, %v365_v26 }
 0x14a   : > { %689 = vmatmul.msk.f32.vlgmr.msrb.gmra.mxu0 %vm331_vm1, %v435_v28  ;;  %696 = vmatmul.msk.f32.vlgmr.msrb.gmra.mxu1 %vm331_vm1, %v435_v28 }
 0x14c   : > { %v426_v31 = vpop.f32.mrf.mxu3 }
 0x14d   : > { %vm430_vm5 = vcmp.ge.f32.partialorder %v426_v31, 0.0  ;;  %v432_v32 = vmul.f32 0.01, %v426_v31 }
 0x14f   : > { %v434_v34 = vsel %vm430_vm5, %v426_v31, %v432_v32 }
 0x150   : > { %v436_v35 = vadd.f32 %v434_v34, %v366_v33 }
 0x152   : > { %690 = vmatmul.msk.f32.gmra.mxu0 %vm331_vm1, %v436_v35  ;;  %697 = vmatmul.msk.f32.gmra.mxu1 %vm331_vm1, %v436_v35 }
 0x1c7   : > { %v466_v36 = vpop.f32.mrf.mxu0  ;;  %v526_v37 = vpop.f32.mrf.mxu1 }
 0x1c8   : > { %v467_v44 = vadd.f32 %v760_v38, %v466_v36  ;;  %v527_v45 = vadd.f32 %v761_v39, %v526_v37 }
 0x1cf   : > { %v469_v40 = vpop.f32.mrf.mxu0  ;;  %v529_v41 = vpop.f32.mrf.mxu1 }
 0x1d0   : > { %v470_v42 = vadd.f32 %v760_v38, %v469_v40  ;;  %v530_v43 = vadd.f32 %v761_v39, %v529_v41 }
 0x1d2   : > { %486 = vmatpush.msrb.mxu2 %v470_v42  ;;  %546 = vmatpush.msrb.mxu3 %v530_v43 }
 0x1d4   : > { %487 = vmatpush.msrb.mxu2 %v467_v44  ;;  %547 = vmatpush.msrb.mxu3 %v527_v45 }
 0x1d5   : > { %691 = vmatmul.msk.f32.vlgmr.msrb.gmra.mxu2 %vm331_vm1, %v329_v10  ;;  %698 = vmatmul.msk.f32.vlgmr.msrb.gmra.mxu3 %vm331_vm1, %v685_v15 }
 0x1dd   : > { %692 = vmatmul.msk.f32.gmra.mxu2 %vm331_vm1, %v330_v16  ;;  %699 = vmatmul.msk.f32.gmra.mxu3 %vm331_vm1, %v686_v17 }
 0x258   : > { %v489_v46 = vpop.f32.mrf.mxu2  ;;  %v549_v47 = vpop.f32.mrf.mxu3 }
 0x259   : > { %vm495_vm6 = vcmp.ge.f32.partialorder %v489_v46, 0.0  ;;  %v497_v48 = vmul.f32 0.01, %v489_v46  ;;  %vm555_vm7 = vcmp.ge.f32.partialorder %v549_v47, 0.0  ;;  %v557_v49 = vmul.f32 0.01, %v549_v47 }
 0x25b   : > { %v499_v50 = vsel %vm495_vm6, %v489_v46, %v497_v48  ;;  %v559_v51 = vsel %vm555_vm7, %v549_v47, %v557_v49 }
 0x25c   : > { %v561_v52 = vadd.f32 %v559_v51, %v499_v50 }
 0x25e   : > { %563 = vst.msk [vmem:[%s286_s26] sm:$0xff] %vm331_vm1, %v561_v52 }
 0x260   : > { %v492_v53 = vpop.f32.mrf.mxu2  ;;  %v552_v54 = vpop.f32.mrf.mxu3 }
 0x261   : > { %vm496_vm8 = vcmp.ge.f32.partialorder %v492_v53, 0.0  ;;  %v498_v55 = vmul.f32 0.01, %v492_v53  ;;  %vm556_vm9 = vcmp.ge.f32.partialorder %v552_v54, 0.0  ;;  %v558_v56 = vmul.f32 0.01, %v552_v54 }
 0x263   : > { %v500_v57 = vsel %vm496_vm8, %v492_v53, %v498_v55  ;;  %v560_v58 = vsel %vm556_vm9, %v552_v54, %v558_v56 }
 0x264   : > { %v562_v59 = vadd.f32 %v560_v58, %v500_v57 }
 0x266   : > { %564 = vst.msk [vmem:[%s286_s26 + $0x8] sm:$0xff] %vm331_vm1, %v562_v59 }
 0x267   : > { %819 = shalt.err (!%p816_p7)
}
 0x268   : > { %s862_s18 = smov 128   ;;  %s863_s29 = smov 8  }
 0x269   : > { %710 = dma.vmem_to_hbm [thread:$0]  (%p949_p11), %s579_s13, 256, %s581_s7, %s566_s25, %s862_s18, %s862_s18, %s863_s29  }
 0x26a PF: > { %s595_s17 = sand.u32 1, %s846_s21   ;;  %p1094_p5 = scmp.ge.s32.totalorder %s858_s24, 2 }
 0x26b   : > { %s596_s19 = scalar_lea.sflag [#allocation4], %s595_s17 }
 0x26c   : > { %p717_p8 = pnand %p1094_p5, %p953_p12 }
 0x26e   : > { %p718_p10 = pneg %p717_p8 }
 0x270   : > { %841 = dma.done.wait (%p718_p10), %s596_s19, 256  }
 0x271   : > { %843 = vsyncadd (%p718_p10), %s596_s19, 4294967040  ;;  %p19_p2 = scmp.ge.s32.totalorder %s924_s27, 4   ;;  %s1095_s21 = smov %s850_s22 }
 0x272   : > { %s1096_s22 = smov %s854_s23  ;;  %s1097_s23 = smov %s936_s30 }
 0x273   : > { %s1098_s24 = smov %s924_s27  ;;  %21 = sbr.rel (!%p19_p2) target bundleno = 5 (0x5), region = 97 }
 0x278   :  { %602 = vsyncpa [#allocation3], 1 }
 0x279   :  { %604 = vsyncpa [#allocation3 + $0x1], 1 }
 0x27a   :  { %605 = vsyncpa [#allocation4], 1 }
 0x27b   :  { %607 = vsyncpa [#allocation4 + $0x1], 1 }

</bundles_post_ra>
